<compile_context>
chip_gen: v6e
topology: v6e:2x2x1
jax: 0.10.0
libtpu: 0.0.40
codegen_flags: <defaults>
</compile_context>

<pallas_src>
import jax
import jax.numpy as jnp
from jax.experimental import pallas as pl
from jax.experimental.pallas import tpu as pltpu


def _round_up(x, m):
    return (x + m - 1) // m * m


# ----------------------------- Pallas kernel --------------------------------

def lstm_pooling_kernel(x_ref, wih_ref, whh_ref, b_ref, o_ref):
    """x_ref: (L, TB, H) bf16; wih_ref: (H, 4*Dp) bf16; whh_ref: (Dp, 4*Dp) bf16;
    b_ref: (1, 4*Dp) f32; o_ref: (TB, Dp) f32."""
    L, TB, H = x_ref.shape
    Dp = whh_ref.shape[0]

    whh = whh_ref[...]                       # (Dp, 4Dp) bf16, resident across t
    b = b_ref[...]                           # (1, 4Dp)  f32

    # Hoisted input projection: one large bf16 x bf16 -> f32 MXU matmul over
    # all L timesteps (amortizes the W_ih weight push), bias folded in once.
    # Reshape only collapses leading dims; lane (last) dim is unchanged.
    x_flat = x_ref[...].reshape(L * TB, H)                       # bf16
    gates_x = jnp.dot(x_flat, wih_ref[...],
                      preferred_element_type=jnp.float32) + b    # (L*TB, 4Dp) f32

    h = jnp.zeros((TB, Dp), jnp.float32)
    c = jnp.zeros((TB, Dp), jnp.float32)

    # Serial recurrence (L is small -> static unroll).  Critical path is just
    # the small bf16 h @ W_hh matmul plus EUP sigmoid/tanh; gate slices are
    # 128-lane aligned because Dp is a multiple of 128.
    for t in range(L):
        gates = (gates_x[t * TB:(t + 1) * TB, :]
                 + jnp.dot(h.astype(jnp.bfloat16), whh,
                           preferred_element_type=jnp.float32))  # (TB, 4Dp)
        i_g = jax.nn.sigmoid(gates[:, 0 * Dp:1 * Dp])
        f_g = jax.nn.sigmoid(gates[:, 1 * Dp:2 * Dp])
        g_g = jnp.tanh(gates[:, 2 * Dp:3 * Dp])
        o_g = jax.nn.sigmoid(gates[:, 3 * Dp:4 * Dp])
        c = f_g * c + i_g * g_g
        h = o_g * jnp.tanh(c)

    # out[:, -1, :] of the LSTM sequence == final hidden state h_L.
    o_ref[...] = h.astype(o_ref.dtype)


# ------------------------- tiling / VMEM budgeting ---------------------------

def _vmem_limit_bytes():
    """Generation-aware scoped-VMEM limit: raise well above the 16/32 MiB
    defaults on v5e/v6e (128 MiB physical), stay under v7x's 64 MiB."""
    phys = 64 * 1024 * 1024                      # conservative fallback (v7x)
    try:
        phys = int(pltpu.get_tpu_info().vmem_capacity_bytes)
    except Exception:                            # API drift / no TPU: keep fallback
        pass
    return min(int(phys * 0.8), 100 * 1024 * 1024)


def _choose_batch_tile(B, L, H, Dp, budget_bytes):
    """Pick TB so that EVERYTHING resident per grid step fits the budget:
    2x bf16 x tile, staged f32 gates, h/c state, gate temporaries, 2x f32
    output tile, plus the (single-buffered) bf16 weights."""
    G4 = 4 * Dp
    per_row = (2 * L * H * 2          # double-buffered bf16 x tile
               + L * G4 * 4           # hoisted input-projection gates (f32)
               + 2 * Dp * 4           # h, c state
               + 4 * Dp * 4           # gate temporaries / slack
               + 2 * G4 * 4           # per-timestep gates value + slack
               + 2 * Dp * 4)          # double-buffered f32 output tile
    fixed = H * G4 * 2 + Dp * G4 * 2 + G4 * 4    # bf16 weights + f32 bias (x1)
    avail = max(budget_bytes - fixed, per_row * 8)
    tb = max(8, (avail // per_row) // 8 * 8)     # sublane-aligned
    tb = min(tb, 1024)
    if tb >= B:
        if B >= 16:
            # Guarantee >=2 grid steps so v7x's second TensorCore gets work;
            # neutral on v5e/v6e (single TC).
            tb = max(8, _round_up(pl.cdiv(B, 2), 8))
        else:
            tb = B                               # tiny batch: one full-dim tile
    return tb


# ------------------------------ pallas_call ----------------------------------

def lstm_pooling(x_lbh, w_ih_t, w_hh_t, b):
    """x_lbh: (L, B, H) bf16; w_ih_t: (H, 4*Dp) bf16; w_hh_t: (Dp, 4*Dp) bf16;
    b: (1, 4*Dp) f32  ->  (B, Dp) f32 (last LSTM hidden state, lane-padded)."""
    L, B, H = x_lbh.shape
    Dp = w_hh_t.shape[0]
    G4 = 4 * Dp

    vmem_limit = _vmem_limit_bytes()
    TB = _choose_batch_tile(B, L, H, Dp, int(vmem_limit * 0.75))
    grid = (pl.cdiv(B, TB),)

    cost = pl.CostEstimate(
        flops=2 * B * L * (H + Dp) * G4 + 10 * B * L * Dp,
        transcendentals=5 * B * L * Dp,
        bytes_accessed=(B * L * H * 2                      # bf16 x
                        + (H * G4 + Dp * G4) * 2 + G4 * 4  # bf16 weights + bias
                        + B * Dp * 4),                     # f32 out
    )

    # Constant index_map -> double-buffering the weights is pure VMEM waste.
    weight_mode = pl.Buffered(1)

    return pl.pallas_call(
        lstm_pooling_kernel,
        out_shape=jax.ShapeDtypeStruct((B, Dp), jnp.float32),
        grid_spec=pltpu.PrefetchScalarGridSpec(
            num_scalar_prefetch=0,
            grid=grid,
            in_specs=[
                pl.BlockSpec((L, TB, H), lambda i: (0, i, 0)),        # x tile
                pl.BlockSpec((H, G4), lambda i: (0, 0),
                             pipeline_mode=weight_mode),              # W_ih^T
                pl.BlockSpec((Dp, G4), lambda i: (0, 0),
                             pipeline_mode=weight_mode),              # W_hh^T
                pl.BlockSpec((1, G4), lambda i: (0, 0),
                             pipeline_mode=weight_mode),              # bias
            ],
            out_specs=pl.BlockSpec((TB, Dp), lambda i: (i, 0)),
        ),
        compiler_params=pltpu.CompilerParams(
            dimension_semantics=("parallel",),      # megacore shard on v7x
            vmem_limit_bytes=vmem_limit),
        cost_estimate=cost,
    )(x_lbh, w_ih_t, w_hh_t, b)


# ---------------- PyTorch-module-equivalent glue (plain JAX) ----------------

def get_cls_hidden_states(all_hidden_states, num_hidden_layers, hidden_size):
    # torch.stack([all_hidden_states[i][:, 0].squeeze() for i in 1..L], dim=-1)
    # NOTE: .squeeze() matches torch (drops batch dim when B == 1, as upstream).
    cls_per_layer = [jnp.squeeze(all_hidden_states[layer_i][:, 0])
                     for layer_i in range(1, num_hidden_layers + 1)]
    hidden_states = jnp.stack(cls_per_layer, axis=-1)              # (B, H, L)
    # Bug-compatible raw-memory .view(-1, L, H) (intentional axis mixing).
    return hidden_states.reshape(-1, num_hidden_layers, hidden_size)  # (B, L, H)


def _pad_gates(w, D, Dp):
    """Pad each of the 4 gate blocks along the leading 4*D axis from D to Dp."""
    if Dp == D:
        return w
    w4 = w.reshape(4, D, *w.shape[1:])
    pad = [(0, 0), (0, Dp - D)] + [(0, 0)] * (w4.ndim - 2)
    return jnp.pad(w4, pad).reshape(4 * Dp, *w.shape[1:])


def lstm_pooling_forward(all_hidden_states, weight_ih, weight_hh, bias_ih, bias_hh,
                         num_hidden_layers, hidden_size):
    D = weight_hh.shape[1]
    Dp = _round_up(D, 128)                 # lane-align gate slices & output tile

    x_blh = get_cls_hidden_states(all_hidden_states, num_hidden_layers, hidden_size)
    # (L, B, H) bf16 layout: the per-tile x slab is contiguous/lane-dense and
    # HBM traffic of the dominant input is halved; f32 accumulation in-kernel.
    x_lbh = jnp.transpose(x_blh, (1, 0, 2)).astype(jnp.bfloat16)

    # bf16 weights -> native MXU bf16xbf16->f32 path.  Pad each gate block
    # (and W_hh's recurrent input dim) with zeros to Dp; padded h columns stay
    # exactly 0 through the recurrence, so results are unchanged after slicing.
    w_ih_p = _pad_gates(weight_ih, D, Dp)                        # (4Dp, H)
    w_hh_p = _pad_gates(weight_hh, D, Dp)                        # (4Dp, D)
    w_hh_p = jnp.pad(w_hh_p, ((0, 0), (0, Dp - D)))              # (4Dp, Dp)
    w_ih_t = w_ih_p.T.astype(jnp.bfloat16)                       # (H, 4Dp)
    w_hh_t = w_hh_p.T.astype(jnp.bfloat16)                       # (Dp, 4Dp)
    b = _pad_gates(bias_ih + bias_hh, D, Dp).reshape(1, -1)      # (1, 4Dp)
    b = b.astype(jnp.float32)

    out_p = lstm_pooling(x_lbh, w_ih_t, w_hh_t, b)               # (B, Dp)
    # self.dropout(out) is identity at inference time.
    return out_p[:, :D]


def reference_lstm_pooling(x_blh, weight_ih, weight_hh, bias_ih, bias_hh):
    """Pure-JAX reference of the same math (PyTorch nn.LSTM weight layout),
    mirroring the kernel's bf16 matmul operands / f32 accumulation."""
    B, L, H = x_blh.shape
    D = weight_hh.shape[1]
    x = x_blh.astype(jnp.bfloat16).astype(jnp.float32)
    wih = weight_ih.astype(jnp.bfloat16).astype(jnp.float32)
    whh = weight_hh.astype(jnp.bfloat16).astype(jnp.float32)
    bias = (bias_ih + bias_hh).astype(jnp.float32)
    h = jnp.zeros((B, D), jnp.float32)
    c = jnp.zeros((B, D), jnp.float32)
    for t in range(L):
        hb = h.astype(jnp.bfloat16).astype(jnp.float32)
        g = x[:, t, :] @ wih.T + hb @ whh.T + bias
        i_g = jax.nn.sigmoid(g[:, 0 * D:1 * D])
        f_g = jax.nn.sigmoid(g[:, 1 * D:2 * D])
        g_g = jnp.tanh(g[:, 2 * D:3 * D])
        o_g = jax.nn.sigmoid(g[:, 3 * D:4 * D])
        c = f_g * c + i_g * g_g
        h = o_g * jnp.tanh(c)
    return h


if __name__ == "__main__":
    B, S, H = 2, 8, 32           # batch, seq, hidden_size
    L = 4                        # num_hidden_layers
    D = 16                       # hiddendim_lstm

    key = jax.random.PRNGKey(0)
    k_hs, k_wi, k_wh, k_bi, k_bh = jax.random.split(key, 5)

    # Synthetic backbone hidden states: tuple of L+1 tensors (B, S, H).
    hidden_stack = 0.1 * jax.random.normal(k_hs, (L + 1, B, S, H), jnp.float32)
    all_hidden_states = tuple(hidden_stack[i] for i in range(L + 1))

    # Deterministic parameters in PyTorch nn.LSTM layout:
    #   weight_ih (4D, H), weight_hh (4D, D), biases (4D,), gate order [i,f,g,o].
    weight_ih = 0.25 * jax.random.normal(k_wi, (4 * D, H), jnp.float32)
    weight_hh = 0.25 * jax.random.normal(k_wh, (4 * D, D), jnp.float32)
    bias_ih = 0.1 * jax.random.normal(k_bi, (4 * D,), jnp.float32)
    bias_hh = 0.1 * jax.random.normal(k_bh, (4 * D,), jnp.float32)

    out = lstm_pooling_forward(all_hidden_states, weight_ih, weight_hh,
                               bias_ih, bias_hh, L, H)
    out = jax.block_until_ready(out)

    # Cross-check against a pure-JAX reference using the same bf16 casts.
    x_blh = get_cls_hidden_states(all_hidden_states, L, H)
    ref = reference_lstm_pooling(x_blh, weight_ih, weight_hh, bias_ih, bias_hh)

    assert out.shape == (B, D)
    assert jnp.allclose(out, ref, atol=1e-2, rtol=1e-2)

    print("KERNEL_OK")
</pallas_src>

<mosaic_0001>
module attributes {stable_mosaic.version = 11 : i64} {
  func.func @lstm_pooling_kernel(%arg0: i32, %arg1: memref<4x2x32xbf16, #tpu.memory_space<vmem>>, %arg2: memref<32x512xbf16, #tpu.memory_space<vmem>>, %arg3: memref<128x512xbf16, #tpu.memory_space<vmem>>, %arg4: memref<1x512xf32, #tpu.memory_space<vmem>>, %arg5: memref<2x128xf32, #tpu.memory_space<vmem>>) attributes {dimension_semantics = [#tpu.dimension_semantics<parallel>], iteration_bounds = array<i64: 1>, scalar_prefetch = 0 : i64, scratch_operands = 0 : i64, tpu.core_type = #tpu.core_type<tc>, window_params = [{transform_indices = @transform_0, window_bounds = array<i64: 4, 2, 32>}, {pipeline_mode = #tpu.pipeline_mode<synchronous>, transform_indices = @transform_1, window_bounds = array<i64: 32, 512>}, {pipeline_mode = #tpu.pipeline_mode<synchronous>, transform_indices = @transform_2, window_bounds = array<i64: 128, 512>}, {pipeline_mode = #tpu.pipeline_mode<synchronous>, transform_indices = @transform_3, window_bounds = array<i64: 1, 512>}, {transform_indices = @transform_4, window_bounds = array<i64: 2, 128>}]} {
    %c0 = arith.constant 0 : index
    %c0_0 = arith.constant 0 : index
    %0 = vector.load %arg3[%c0, %c0_0] : memref<128x512xbf16, #tpu.memory_space<vmem>>, vector<128x512xbf16>
    %c0_1 = arith.constant 0 : index
    %c0_2 = arith.constant 0 : index
    %1 = vector.load %arg4[%c0_1, %c0_2] : memref<1x512xf32, #tpu.memory_space<vmem>>, vector<1x512xf32>
    %c0_3 = arith.constant 0 : index
    %c0_4 = arith.constant 0 : index
    %c0_5 = arith.constant 0 : index
    %2 = vector.load %arg1[%c0_3, %c0_4, %c0_5] : memref<4x2x32xbf16, #tpu.memory_space<vmem>>, vector<4x2x32xbf16>
    %3 = vector.shape_cast %2 : vector<4x2x32xbf16> to vector<8x32xbf16>
    %c0_6 = arith.constant 0 : index
    %c0_7 = arith.constant 0 : index
    %4 = vector.load %arg2[%c0_6, %c0_7] : memref<32x512xbf16, #tpu.memory_space<vmem>>, vector<32x512xbf16>
    %cst = arith.constant dense<0.000000e+00> : vector<8x512xf32>
    %5 = tpu.matmul %3, %4, %cst {dimension_numbers = #tpu.dot_dimension_numbers<[1], [0], [0], [1], [0, 0, 1, 1], [], []>} : vector<8x32xbf16>, vector<32x512xbf16>, vector<8x512xf32> -> vector<8x512xf32>
    %6 = vector.broadcast %1 : vector<1x512xf32> to vector<8x512xf32>
    %7 = arith.addf %5, %6 : vector<8x512xf32>
    %cst_8 = arith.constant 0.000000e+00 : f32
    %8 = vector.broadcast %cst_8 : f32 to vector<2x128xf32>
    %cst_9 = arith.constant 0.000000e+00 : f32
    %9 = vector.broadcast %cst_9 : f32 to vector<2x128xf32>
    %10 = vector.extract_strided_slice %7 {offsets = [0, 0], sizes = [2, 512], strides = [1, 1]} : vector<8x512xf32> to vector<2x512xf32>
    %11 = arith.truncf %8 : vector<2x128xf32> to vector<2x128xbf16>
    %cst_10 = arith.constant dense<0.000000e+00> : vector<2x512xf32>
    %12 = tpu.matmul %11, %0, %cst_10 {dimension_numbers = #tpu.dot_dimension_numbers<[1], [0], [0], [1], [0, 0, 1, 1], [], []>} : vector<2x128xbf16>, vector<128x512xbf16>, vector<2x512xf32> -> vector<2x512xf32>
    %13 = arith.addf %10, %12 : vector<2x512xf32>
    %14 = vector.extract_strided_slice %13 {offsets = [0, 0], sizes = [2, 128], strides = [1, 1]} : vector<2x512xf32> to vector<2x128xf32>
    %15 = arith.negf %14 : vector<2x128xf32>
    %16 = math.exp %15 : vector<2x128xf32>
    %cst_11 = arith.constant 1.000000e+00 : f32
    %17 = vector.broadcast %cst_11 : f32 to vector<2x128xf32>
    %18 = arith.addf %17, %16 : vector<2x128xf32>
    %19 = arith.divf %17, %18 : vector<2x128xf32>
    %20 = vector.extract_strided_slice %13 {offsets = [0, 128], sizes = [2, 128], strides = [1, 1]} : vector<2x512xf32> to vector<2x128xf32>
    %21 = arith.negf %20 : vector<2x128xf32>
    %22 = math.exp %21 : vector<2x128xf32>
    %cst_12 = arith.constant 1.000000e+00 : f32
    %23 = vector.broadcast %cst_12 : f32 to vector<2x128xf32>
    %24 = arith.addf %23, %22 : vector<2x128xf32>
    %25 = arith.divf %23, %24 : vector<2x128xf32>
    %26 = vector.extract_strided_slice %13 {offsets = [0, 256], sizes = [2, 128], strides = [1, 1]} : vector<2x512xf32> to vector<2x128xf32>
    %27 = math.tanh %26 : vector<2x128xf32>
    %28 = vector.extract_strided_slice %13 {offsets = [0, 384], sizes = [2, 128], strides = [1, 1]} : vector<2x512xf32> to vector<2x128xf32>
    %29 = arith.negf %28 : vector<2x128xf32>
    %30 = math.exp %29 : vector<2x128xf32>
    %cst_13 = arith.constant 1.000000e+00 : f32
    %31 = vector.broadcast %cst_13 : f32 to vector<2x128xf32>
    %32 = arith.addf %31, %30 : vector<2x128xf32>
    %33 = arith.divf %31, %32 : vector<2x128xf32>
    %34 = arith.mulf %25, %9 : vector<2x128xf32>
    %35 = arith.mulf %19, %27 : vector<2x128xf32>
    %36 = arith.addf %34, %35 : vector<2x128xf32>
    %37 = math.tanh %36 : vector<2x128xf32>
    %38 = arith.mulf %33, %37 : vector<2x128xf32>
    %39 = vector.extract_strided_slice %7 {offsets = [2, 0], sizes = [2, 512], strides = [1, 1]} : vector<8x512xf32> to vector<2x512xf32>
    %40 = arith.truncf %38 : vector<2x128xf32> to vector<2x128xbf16>
    %cst_14 = arith.constant dense<0.000000e+00> : vector<2x512xf32>
    %41 = tpu.matmul %40, %0, %cst_14 {dimension_numbers = #tpu.dot_dimension_numbers<[1], [0], [0], [1], [0, 0, 1, 1], [], []>} : vector<2x128xbf16>, vector<128x512xbf16>, vector<2x512xf32> -> vector<2x512xf32>
    %42 = arith.addf %39, %41 : vector<2x512xf32>
    %43 = vector.extract_strided_slice %42 {offsets = [0, 0], sizes = [2, 128], strides = [1, 1]} : vector<2x512xf32> to vector<2x128xf32>
    %44 = arith.negf %43 : vector<2x128xf32>
    %45 = math.exp %44 : vector<2x128xf32>
    %cst_15 = arith.constant 1.000000e+00 : f32
    %46 = vector.broadcast %cst_15 : f32 to vector<2x128xf32>
    %47 = arith.addf %46, %45 : vector<2x128xf32>
    %48 = arith.divf %46, %47 : vector<2x128xf32>
    %49 = vector.extract_strided_slice %42 {offsets = [0, 128], sizes = [2, 128], strides = [1, 1]} : vector<2x512xf32> to vector<2x128xf32>
    %50 = arith.negf %49 : vector<2x128xf32>
    %51 = math.exp %50 : vector<2x128xf32>
    %cst_16 = arith.constant 1.000000e+00 : f32
    %52 = vector.broadcast %cst_16 : f32 to vector<2x128xf32>
    %53 = arith.addf %52, %51 : vector<2x128xf32>
    %54 = arith.divf %52, %53 : vector<2x128xf32>
    %55 = vector.extract_strided_slice %42 {offsets = [0, 256], sizes = [2, 128], strides = [1, 1]} : vector<2x512xf32> to vector<2x128xf32>
    %56 = math.tanh %55 : vector<2x128xf32>
    %57 = vector.extract_strided_slice %42 {offsets = [0, 384], sizes = [2, 128], strides = [1, 1]} : vector<2x512xf32> to vector<2x128xf32>
    %58 = arith.negf %57 : vector<2x128xf32>
    %59 = math.exp %58 : vector<2x128xf32>
    %cst_17 = arith.constant 1.000000e+00 : f32
    %60 = vector.broadcast %cst_17 : f32 to vector<2x128xf32>
    %61 = arith.addf %60, %59 : vector<2x128xf32>
    %62 = arith.divf %60, %61 : vector<2x128xf32>
    %63 = arith.mulf %54, %36 : vector<2x128xf32>
    %64 = arith.mulf %48, %56 : vector<2x128xf32>
    %65 = arith.addf %63, %64 : vector<2x128xf32>
    %66 = math.tanh %65 : vector<2x128xf32>
    %67 = arith.mulf %62, %66 : vector<2x128xf32>
    %68 = vector.extract_strided_slice %7 {offsets = [4, 0], sizes = [2, 512], strides = [1, 1]} : vector<8x512xf32> to vector<2x512xf32>
    %69 = arith.truncf %67 : vector<2x128xf32> to vector<2x128xbf16>
    %cst_18 = arith.constant dense<0.000000e+00> : vector<2x512xf32>
    %70 = tpu.matmul %69, %0, %cst_18 {dimension_numbers = #tpu.dot_dimension_numbers<[1], [0], [0], [1], [0, 0, 1, 1], [], []>} : vector<2x128xbf16>, vector<128x512xbf16>, vector<2x512xf32> -> vector<2x512xf32>
    %71 = arith.addf %68, %70 : vector<2x512xf32>
    %72 = vector.extract_strided_slice %71 {offsets = [0, 0], sizes = [2, 128], strides = [1, 1]} : vector<2x512xf32> to vector<2x128xf32>
    %73 = arith.negf %72 : vector<2x128xf32>
    %74 = math.exp %73 : vector<2x128xf32>
    %cst_19 = arith.constant 1.000000e+00 : f32
    %75 = vector.broadcast %cst_19 : f32 to vector<2x128xf32>
    %76 = arith.addf %75, %74 : vector<2x128xf32>
    %77 = arith.divf %75, %76 : vector<2x128xf32>
    %78 = vector.extract_strided_slice %71 {offsets = [0, 128], sizes = [2, 128], strides = [1, 1]} : vector<2x512xf32> to vector<2x128xf32>
    %79 = arith.negf %78 : vector<2x128xf32>
    %80 = math.exp %79 : vector<2x128xf32>
    %cst_20 = arith.constant 1.000000e+00 : f32
    %81 = vector.broadcast %cst_20 : f32 to vector<2x128xf32>
    %82 = arith.addf %81, %80 : vector<2x128xf32>
    %83 = arith.divf %81, %82 : vector<2x128xf32>
    %84 = vector.extract_strided_slice %71 {offsets = [0, 256], sizes = [2, 128], strides = [1, 1]} : vector<2x512xf32> to vector<2x128xf32>
    %85 = math.tanh %84 : vector<2x128xf32>
    %86 = vector.extract_strided_slice %71 {offsets = [0, 384], sizes = [2, 128], strides = [1, 1]} : vector<2x512xf32> to vector<2x128xf32>
    %87 = arith.negf %86 : vector<2x128xf32>
    %88 = math.exp %87 : vector<2x128xf32>
    %cst_21 = arith.constant 1.000000e+00 : f32
    %89 = vector.broadcast %cst_21 : f32 to vector<2x128xf32>
    %90 = arith.addf %89, %88 : vector<2x128xf32>
    %91 = arith.divf %89, %90 : vector<2x128xf32>
    %92 = arith.mulf %83, %65 : vector<2x128xf32>
    %93 = arith.mulf %77, %85 : vector<2x128xf32>
    %94 = arith.addf %92, %93 : vector<2x128xf32>
    %95 = math.tanh %94 : vector<2x128xf32>
    %96 = arith.mulf %91, %95 : vector<2x128xf32>
    %97 = vector.extract_strided_slice %7 {offsets = [6, 0], sizes = [2, 512], strides = [1, 1]} : vector<8x512xf32> to vector<2x512xf32>
    %98 = arith.truncf %96 : vector<2x128xf32> to vector<2x128xbf16>
    %cst_22 = arith.constant dense<0.000000e+00> : vector<2x512xf32>
    %99 = tpu.matmul %98, %0, %cst_22 {dimension_numbers = #tpu.dot_dimension_numbers<[1], [0], [0], [1], [0, 0, 1, 1], [], []>} : vector<2x128xbf16>, vector<128x512xbf16>, vector<2x512xf32> -> vector<2x512xf32>
    %100 = arith.addf %97, %99 : vector<2x512xf32>
    %101 = vector.extract_strided_slice %100 {offsets = [0, 0], sizes = [2, 128], strides = [1, 1]} : vector<2x512xf32> to vector<2x128xf32>
    %102 = arith.negf %101 : vector<2x128xf32>
    %103 = math.exp %102 : vector<2x128xf32>
    %cst_23 = arith.constant 1.000000e+00 : f32
    %104 = vector.broadcast %cst_23 : f32 to vector<2x128xf32>
    %105 = arith.addf %104, %103 : vector<2x128xf32>
    %106 = arith.divf %104, %105 : vector<2x128xf32>
    %107 = vector.extract_strided_slice %100 {offsets = [0, 128], sizes = [2, 128], strides = [1, 1]} : vector<2x512xf32> to vector<2x128xf32>
    %108 = arith.negf %107 : vector<2x128xf32>
    %109 = math.exp %108 : vector<2x128xf32>
    %cst_24 = arith.constant 1.000000e+00 : f32
    %110 = vector.broadcast %cst_24 : f32 to vector<2x128xf32>
    %111 = arith.addf %110, %109 : vector<2x128xf32>
    %112 = arith.divf %110, %111 : vector<2x128xf32>
    %113 = vector.extract_strided_slice %100 {offsets = [0, 256], sizes = [2, 128], strides = [1, 1]} : vector<2x512xf32> to vector<2x128xf32>
    %114 = math.tanh %113 : vector<2x128xf32>
    %115 = vector.extract_strided_slice %100 {offsets = [0, 384], sizes = [2, 128], strides = [1, 1]} : vector<2x512xf32> to vector<2x128xf32>
    %116 = arith.negf %115 : vector<2x128xf32>
    %117 = math.exp %116 : vector<2x128xf32>
    %cst_25 = arith.constant 1.000000e+00 : f32
    %118 = vector.broadcast %cst_25 : f32 to vector<2x128xf32>
    %119 = arith.addf %118, %117 : vector<2x128xf32>
    %120 = arith.divf %118, %119 : vector<2x128xf32>
    %121 = arith.mulf %112, %94 : vector<2x128xf32>
    %122 = arith.mulf %106, %114 : vector<2x128xf32>
    %123 = arith.addf %121, %122 : vector<2x128xf32>
    %124 = math.tanh %123 : vector<2x128xf32>
    %125 = arith.mulf %120, %124 : vector<2x128xf32>
    %c0_26 = arith.constant 0 : index
    %c0_27 = arith.constant 0 : index
    %126 = vector.load %arg5[%c0_26, %c0_27] : memref<2x128xf32, #tpu.memory_space<vmem>>, vector<2x128xf32>
    tpu.vector_store %arg5[%c0_26, %c0_27], %125 {strides = array<i32>} : memref<2x128xf32, #tpu.memory_space<vmem>>, vector<2x128xf32>,
    return
  }
  func.func @transform_0(%arg0: i32) -> (i32, i32, i32) {
    %c0_i32 = arith.constant 0 : i32
    %c0_i32_0 = arith.constant 0 : i32
    %c0_i32_1 = arith.constant 0 : i32
    return %c0_i32, %arg0, %c0_i32_0 : i32, i32, i32
  }
  func.func @transform_1(%arg0: i32) -> (i32, i32) {
    %c0_i32 = arith.constant 0 : i32
    %c0_i32_0 = arith.constant 0 : i32
    %c0_i32_1 = arith.constant 0 : i32
    return %c0_i32, %c0_i32_0 : i32, i32
  }
  func.func @transform_2(%arg0: i32) -> (i32, i32) {
    %c0_i32 = arith.constant 0 : i32
    %c0_i32_0 = arith.constant 0 : i32
    %c0_i32_1 = arith.constant 0 : i32
    return %c0_i32, %c0_i32_0 : i32, i32
  }
  func.func @transform_3(%arg0: i32) -> (i32, i32) {
    %c0_i32 = arith.constant 0 : i32
    %c0_i32_0 = arith.constant 0 : i32
    %c0_i32_1 = arith.constant 0 : i32
    return %c0_i32, %c0_i32_0 : i32, i32
  }
  func.func @transform_4(%arg0: i32) -> (i32, i32) {
    %c0_i32 = arith.constant 0 : i32
    %c0_i32_0 = arith.constant 0 : i32
    return %arg0, %c0_i32 : i32, i32
  }
}

</mosaic_0001>

<bundles_post_ra>
// kernel: tpu_custom_call.1
= control target key start
LH: loop header
LB: loop body
LE: loop exit
PB: predicated region body
PF: predicated region fallthrough
CT: control target
= control target key end

     0   :  { %9 = vsyncpa [#allocation3], 0  ;;  %s1516_s0 = inlined_call_operand.hbm [shape: bf16[4,2,32], index: 0, kind: input, shape index: {}]   ;;  %s1517_s1 = inlined_call_operand.hbm [shape: bf16[32,512], index: 1, kind: input, shape index: {}]   ;;  %s1518_s2 = inlined_call_operand.hbm [shape: bf16[128,512], index: 2, kind: input, shape index: {}]   ;;  %s1519_s3 = inlined_call_operand.vmem [shape: f32[1,512], index: 3, kind: input, shape index: {}]   ;;  %s1520_s4 = inlined_call_operand.hbm [shape: f32[2,128], index: 4, kind: output, shape index: {}]  }
   0x1   :  { %10 = vsyncpa [#allocation6], 0 }
   0x2   :  { %11 = vsyncpa [#allocation4], 0  ;;  %s1224_s15 = smov [#allocation5]  }
   0x3   :  { %s29_s16 = sshll.u32 %s1224_s15, 4  ;;  %s30_s16 = int_to_ptr.vmem [resolvable:$true] %s29_s16 }
   0x4   :  { %s1146_s17 = scalar_lea.vmem %s30_s16, 1024  ;;  %p1151_p1 = scmp.lt.s32.totalorder %s30_s16, %s30_s16 }
   0x5   :  { %p1147_p0 = scmp.ne.s32.totalorder %s30_s16, %s1146_s17  ;;  %p1152_p2 = scmp.lt.s32.totalorder %s1146_s17, %s1146_s17 }
   0x7   :  { %p1153_p3 = por %p1152_p2, %p1151_p1 }
   0x9   :  { %p1154_p4 = pnand %p1153_p3, %p1147_p0 }
   0xb   :  { %1157 = shalt.err (!%p1154_p4)
}
   0xc   :  { %s1225_s18 = smov 256   ;;  %s1226_s19 = smov 16  }
   0xd   :  { %35 = dma.hbm_to_vmem [thread:$0]  %s1517_s1, 1024, %s30_s16, [#allocation6], %s1225_s18, %s1225_s18, %s1226_s19  }
   0xe   :  { %s1227_s22 = smov [#allocation2]  }
   0xf   :  { %s17_s23 = sshll.u32 %s1227_s22, 4  ;;  %s18_s23 = int_to_ptr.vmem [resolvable:$true] %s17_s23 }
  0x10   :  { %s1166_s24 = scalar_lea.vmem %s18_s23, 64  ;;  %p1171_p6 = scmp.lt.s32.totalorder %s18_s23, %s18_s23 }
  0x11   :  { %p1167_p5 = scmp.ne.s32.totalorder %s18_s23, %s1166_s24  ;;  %p1172_p7 = scmp.lt.s32.totalorder %s1166_s24, %s1166_s24 }
  0x13   :  { %p1173_p8 = por %p1172_p7, %p1171_p6 }
  0x15   :  { %p1174_p9 = pnand %p1173_p8, %p1167_p5 }
  0x17   :  { %1177 = shalt.err (!%p1174_p9)
}
  0x18   :  { %s1228_s25 = smov 1   ;;  %s1229_s28 = smov [#allocation7]  }
  0x19   :  { %23 = dma.hbm_to_vmem [thread:$0]  %s1516_s0, 64, %s18_s23, [#allocation3], %s1226_s19, %s1226_s19, %s1228_s25  }
  0x1a   :  { %s41_s29 = sshll.u32 %s1229_s28, 4  ;;  %s42_s29 = int_to_ptr.vmem [resolvable:$true] %s41_s29 }
  0x1b   :  { %s1186_s30 = scalar_lea.vmem %s42_s29, 4096  ;;  %p1191_p11 = scmp.lt.s32.totalorder %s42_s29, %s42_s29 }
  0x1c   :  { %p1187_p10 = scmp.ne.s32.totalorder %s42_s29, %s1186_s30  ;;  %p1192_p12 = scmp.lt.s32.totalorder %s1186_s30, %s1186_s30 }
  0x1e   :  { %p1193_p13 = por %p1192_p12, %p1191_p11 }
  0x20   :  { %p1194_p0 = pnand %p1193_p13, %p1187_p10 }
  0x22   :  { %1197 = shalt.err (!%p1194_p0)
}
  0x23   :  { %47 = dma.hbm_to_vmem [thread:$0]  %s1518_s2, 4096, %s42_s29, [#allocation6], %s1225_s18, %s1225_s18, %s1226_s19  }
  0x24   :  { %1218 = dma.done.wait [#allocation3], 64  }
  0x25   :  { %1219 = vsyncadd [#allocation3], 4294967232 }
  0x26   :  { %1220 = dma.done.wait [#allocation6], 5120  }
  0x27   :  { %1221 = vsyncadd [#allocation6], 4294962176  ;;  %v1230_v0 = vmov 0   ;;  %v106_v1 = vlaneseq  ;;  %v1231_v2 = vmov 1966171168   ;;  %vm194_vm0 = vcmask 261120  }
  0x28   :  { %230 = vmatprep.mubr.bf16.mxu0 %v1230_v0  ;;  %271 = vmatprep.mubr.bf16.mxu1 %v1230_v0  ;;  %v133_v3 = vunpack.c.l.s4 %v1231_v2  ;;  %v1014_v4 = vld [vmem:[#allocation5 + $0x24] ss:$16 sps:$4 sm:$0xff]   ;;  %v1016_v7 = vld [vmem:[#allocation5 + $0x2c] ss:$16 sps:$4 sm:$0xff]   ;;  %v1018_v8 = vld [vmem:[#allocation5 + $0x20] ss:$16 sps:$4 sm:$0xff]  }
  0x29   :  { %v1269_v5 = vshrl.u32 %v106_v1, 7  ;;  %210 = vmatprep.subr.bf16.mxu0 %v1014_v4  ;;  %v1019_v9 = vld [vmem:[#allocation5 + $0x28] ss:$16 sps:$4 sm:$0xff]   ;;  %251 = vmatprep.subr.bf16.mxu1 %v1016_v7  ;;  %v1020_v10 = vld [vmem:[#allocation5 + $0x4] ss:$16 sps:$4 sm:$0xff]  }
  0x2a   :  { %v134_v6 = vunpack.c.0.s8 %v133_v3  ;;  %211 = vmatpush1.bf16.msra.mxu0 %v1018_v8  ;;  %252 = vmatpush1.bf16.msra.mxu1 %v1019_v9  ;;  %v1022_v11 = vld [vmem:[#allocation5 + $0xc] ss:$16 sps:$4 sm:$0xff]   ;;  %v1024_v12 = vld [vmem:[#allocation5] ss:$16 sps:$4 sm:$0xff]   ;;  %v1025_v14 = vld [vmem:[#allocation5 + $0x8] ss:$16 sps:$4 sm:$0xff]  }
  0x2b   :  { %212 = vmatprep.subr.bf16.mxu0 %v1020_v10  ;;  %v93_v15 = vld [vmem:[#allocation2] sm:$0x1]  ;;  %v94_v16 = vld [vmem:[#allocation2 + $0x1] sm:$0x1]  ;;  %253 = vmatprep.subr.bf16.mxu1 %v1022_v11  ;;  %v95_v17 = vld [vmem:[#allocation2 + $0x2] sm:$0x1] }
  0x2c   :  { %v137_v13 = vsub.s32 %v134_v6, %v1269_v5  ;;  %v96_v18 = vld [vmem:[#allocation2 + $0x3] sm:$0x1]  ;;  %v130_v19 = vcombine.low %v93_v15, %v94_v16  ;;  %v1272_v21 = vld [vmem:[#allocation7 + $0xe4] ss:$16 sps:$4 sm:$0xff]   ;;  %v1278_v26 = vld [vmem:[#allocation7 + $0xe0] ss:$16 sps:$4 sm:$0xff]  }
  0x2d   :  { %v131_v20 = vcombine.low %v95_v17, %v96_v18  ;;  %v1274_v23 = vld [vmem:[#allocation7 + $0xec] ss:$16 sps:$4 sm:$0xff]   ;;  %v1280_v27 = vld [vmem:[#allocation7 + $0xe8] ss:$16 sps:$4 sm:$0xff]   ;;  %v1282_v28 = vld [vmem:[#allocation7 + $0xc4] ss:$16 sps:$4 sm:$0xff]  }
  0x2e   :  { %213 = vmatpush1.bf16.msra.mxu0 %v1024_v12  ;;  %254 = vmatpush1.bf16.msra.mxu1 %v1025_v14  ;;  %v138_v22 = vrot.slane %v130_v19, %v137_v13  ;;  %v1284_v30 = vld [vmem:[#allocation7 + $0xcc] ss:$16 sps:$4 sm:$0xff]   ;;  %v1286_v31 = vld [vmem:[#allocation7 + $0xc0] ss:$16 sps:$4 sm:$0xff]   ;;  %v1290_v32 = vld [vmem:[#allocation7 + $0xc8] ss:$16 sps:$4 sm:$0xff]  }
  0x2f   :  { %v145_v24 = vrot.slane %v131_v20, %v137_v13  ;;  %440 = vmatprep.subr.bf16.mxu0 %v1272_v21  ;;  %481 = vmatprep.subr.bf16.mxu1 %v1274_v23  ;;  %v1292_v33 = vld [vmem:[#allocation7 + $0xa4] ss:$16 sps:$4 sm:$0xff]   ;;  %v1296_v34 = vld [vmem:[#allocation7 + $0xac] ss:$16 sps:$4 sm:$0xff]   ;;  %v1300_v35 = vld [vmem:[#allocation7 + $0xa0] ss:$16 sps:$4 sm:$0xff]  }
  0x30   :  { %v1302_v36 = vld [vmem:[#allocation7 + $0xa8] ss:$16 sps:$4 sm:$0xff]   ;;  %v1306_v37 = vld [vmem:[#allocation7 + $0x84] ss:$16 sps:$4 sm:$0xff]   ;;  %v1310_v38 = vld [vmem:[#allocation7 + $0x8c] ss:$16 sps:$4 sm:$0xff]  }
  0x31   :  { %v146_v25 = vcombine.low %v138_v22, %v145_v24  ;;  %v1312_v39 = vld [vmem:[#allocation7 + $0x80] ss:$16 sps:$4 sm:$0xff]   ;;  %v1316_v40 = vld [vmem:[#allocation7 + $0x88] ss:$16 sps:$4 sm:$0xff]   ;;  %v1318_v41 = vld [vmem:[#allocation7 + $0x64] ss:$16 sps:$4 sm:$0xff]  }
  0x32   :  { %v1322_v42 = vld [vmem:[#allocation7 + $0x6c] ss:$16 sps:$4 sm:$0xff]   ;;  %v1326_v43 = vld [vmem:[#allocation7 + $0x60] ss:$16 sps:$4 sm:$0xff]   ;;  %v1328_v44 = vld [vmem:[#allocation7 + $0x68] ss:$16 sps:$4 sm:$0xff]  }
  0x33   :  { %v153_v29 = vrot.slane %v146_v25, %v137_v13  ;;  %v1332_v45 = vld [vmem:[#allocation7 + $0x44] ss:$16 sps:$4 sm:$0xff]   ;;  %v1334_v46 = vld [vmem:[#allocation7 + $0x4c] ss:$16 sps:$4 sm:$0xff]   ;;  %v1338_v47 = vld [vmem:[#allocation7 + $0x40] ss:$16 sps:$4 sm:$0xff]  }
  0x34   :  { %v1340_v48 = vld [vmem:[#allocation7 + $0x48] ss:$16 sps:$4 sm:$0xff]   ;;  %v1344_v49 = vld [vmem:[#allocation7 + $0x24] ss:$16 sps:$4 sm:$0xff]   ;;  %v1346_v50 = vld [vmem:[#allocation7 + $0x2c] ss:$16 sps:$4 sm:$0xff]  }
  0x35   :  { %959 = vmatmul.mubr.msk.bf16.vlgmr.msra.gmra.mxu0 %vm194_vm0, %v153_v29  ;;  %960 = vmatmul.mubr.msk.bf16.vlgmr.msra.gmra.mxu1 %vm194_vm0, %v153_v29  ;;  %v1350_v51 = vld [vmem:[#allocation7 + $0x20] ss:$16 sps:$4 sm:$0xff]   ;;  %v1352_v52 = vld [vmem:[#allocation7 + $0x28] ss:$16 sps:$4 sm:$0xff]   ;;  %v1356_v53 = vld [vmem:[#allocation7 + $0x4] ss:$16 sps:$4 sm:$0xff]  }
  0x36   :  { %441 = vmatpush1.bf16.msra.mxu0 %v1278_v26  ;;  %482 = vmatpush1.bf16.msra.mxu1 %v1280_v27  ;;  %v1358_v54 = vld [vmem:[#allocation7 + $0xc] ss:$16 sps:$4 sm:$0xff]   ;;  %v1362_v55 = vld [vmem:[#allocation7] ss:$16 sps:$4 sm:$0xff]   ;;  %v1364_v56 = vld [vmem:[#allocation7 + $0x8] ss:$16 sps:$4 sm:$0xff]  }
  0x37   :  { %442 = vmatprep.subr.bf16.mxu0 %v1282_v28  ;;  %483 = vmatprep.subr.bf16.mxu1 %v1284_v30  ;;  %v108_v2 = vsub.s32 0, %v1269_v5  ;;  %v92_v3 = vld [vmem:[%s1519_s3] sm:$0xf]  ;;  %v112_v4 = vsub.s32 1, %v1269_v5  ;;  %v120_v13 = vsub.s32 3, %v1269_v5  ;;  %v116_v29 = vsub.s32 2, %v1269_v5 }
  0x38   :  { %472 = vmatprep.mubr.bf16.mxu0 %v1230_v0  ;;  %513 = vmatprep.mubr.bf16.mxu1 %v1230_v0  ;;  %s1232_s3 = smov [#allocation8]  }
  0x39   :  { %v109_v6 = vrot.slane %v92_v3, %v108_v2  ;;  %v113_v7 = vrot.slane %v92_v3, %v112_v4  ;;  %v121_v22 = vrot.slane %v92_v3, %v120_v13  ;;  %s941_s6 = sshll.u32 %s1232_s3, 4  ;;  %s942_s6 = int_to_ptr.vmem [resolvable:$true] %s941_s6 }
  0x3a   :  { %443 = vmatpush1.bf16.msra.mxu0 %v1286_v31  ;;  %484 = vmatpush1.bf16.msra.mxu1 %v1290_v32  ;;  %s1198_s7 = scalar_lea.vmem %s942_s6, 32  ;;  %p1203_p2 = scmp.lt.s32.totalorder %s942_s6, %s942_s6 }
  0x3b   :  { %444 = vmatprep.subr.bf16.mxu0 %v1292_v33  ;;  %485 = vmatprep.subr.bf16.mxu1 %v1296_v34  ;;  %p1199_p1 = scmp.ne.s32.totalorder %s942_s6, %s1198_s7  ;;  %p1204_p3 = scmp.lt.s32.totalorder %s1198_s7, %s1198_s7 }
  0x3d   :  { %p1205_p4 = por %p1204_p3, %p1203_p2 }
  0x3e   :  { %445 = vmatpush1.bf16.msra.mxu0 %v1300_v35  ;;  %486 = vmatpush1.bf16.msra.mxu1 %v1302_v36 }
  0x3f   :  { %446 = vmatprep.subr.bf16.mxu0 %v1306_v37  ;;  %487 = vmatprep.subr.bf16.mxu1 %v1310_v38  ;;  %p1206_p5 = pnand %p1205_p4, %p1199_p1 }
  0x42   :  { %447 = vmatpush1.bf16.msra.mxu0 %v1312_v39  ;;  %488 = vmatpush1.bf16.msra.mxu1 %v1316_v40 }
  0x43   :  { %448 = vmatprep.subr.bf16.mxu0 %v1318_v41  ;;  %489 = vmatprep.subr.bf16.mxu1 %v1322_v42 }
  0x46   :  { %449 = vmatpush1.bf16.msra.mxu0 %v1326_v43  ;;  %490 = vmatpush1.bf16.msra.mxu1 %v1328_v44 }
  0x47   :  { %450 = vmatprep.subr.bf16.mxu0 %v1332_v45  ;;  %491 = vmatprep.subr.bf16.mxu1 %v1334_v46 }
  0x4a   :  { %451 = vmatpush1.bf16.msra.mxu0 %v1338_v47  ;;  %492 = vmatpush1.bf16.msra.mxu1 %v1340_v48 }
  0x4b   :  { %452 = vmatprep.subr.bf16.mxu0 %v1344_v49  ;;  %493 = vmatprep.subr.bf16.mxu1 %v1346_v50 }
  0x4e   :  { %453 = vmatpush1.bf16.msra.mxu0 %v1350_v51  ;;  %494 = vmatpush1.bf16.msra.mxu1 %v1352_v52 }
  0x4f   :  { %454 = vmatprep.subr.bf16.mxu0 %v1356_v53  ;;  %495 = vmatprep.subr.bf16.mxu1 %v1358_v54 }
  0x52   :  { %455 = vmatpush1.bf16.msra.mxu0 %v1362_v55  ;;  %496 = vmatpush1.bf16.msra.mxu1 %v1364_v56 }
  0x53   :  { %551 = vmatprep.subr.bf16.mxu0 %v1272_v21  ;;  %592 = vmatprep.subr.bf16.mxu1 %v1274_v23 }
  0x55   :  { %473 = vmatmul.mubr.bf16.vlgmr.msra.gmra.mxu0 %v1230_v0  ;;  %514 = vmatmul.mubr.bf16.vlgmr.msra.gmra.mxu1 %v1230_v0 }
  0x56   :  { %552 = vmatpush1.bf16.msra.mxu0 %v1278_v26  ;;  %593 = vmatpush1.bf16.msra.mxu1 %v1280_v27 }
  0x57   :  { %553 = vmatprep.subr.bf16.mxu0 %v1282_v28  ;;  %594 = vmatprep.subr.bf16.mxu1 %v1284_v30 }
  0x58   :  { %583 = vmatprep.mubr.bf16.mxu0 %v1230_v0  ;;  %624 = vmatprep.mubr.bf16.mxu1 %v1230_v0 }
  0x5a   :  { %554 = vmatpush1.bf16.msra.mxu0 %v1286_v31  ;;  %595 = vmatpush1.bf16.msra.mxu1 %v1290_v32 }
  0x5b   :  { %555 = vmatprep.subr.bf16.mxu0 %v1292_v33  ;;  %596 = vmatprep.subr.bf16.mxu1 %v1296_v34 }
  0x5e   :  { %556 = vmatpush1.bf16.msra.mxu0 %v1300_v35  ;;  %597 = vmatpush1.bf16.msra.mxu1 %v1302_v36 }
  0x5f   :  { %557 = vmatprep.subr.bf16.mxu0 %v1306_v37  ;;  %598 = vmatprep.subr.bf16.mxu1 %v1310_v38 }
  0x62   :  { %558 = vmatpush1.bf16.msra.mxu0 %v1312_v39  ;;  %599 = vmatpush1.bf16.msra.mxu1 %v1316_v40 }
  0x63   :  { %559 = vmatprep.subr.bf16.mxu0 %v1318_v41  ;;  %600 = vmatprep.subr.bf16.mxu1 %v1322_v42 }
  0x66   :  { %560 = vmatpush1.bf16.msra.mxu0 %v1326_v43  ;;  %601 = vmatpush1.bf16.msra.mxu1 %v1328_v44 }
  0x67   :  { %561 = vmatprep.subr.bf16.mxu0 %v1332_v45  ;;  %602 = vmatprep.subr.bf16.mxu1 %v1334_v46 }
  0x6a   :  { %562 = vmatpush1.bf16.msra.mxu0 %v1338_v47  ;;  %603 = vmatpush1.bf16.msra.mxu1 %v1340_v48 }
  0x6b   :  { %563 = vmatprep.subr.bf16.mxu0 %v1344_v49  ;;  %604 = vmatprep.subr.bf16.mxu1 %v1346_v50 }
  0x6e   :  { %564 = vmatpush1.bf16.msra.mxu0 %v1350_v51  ;;  %605 = vmatpush1.bf16.msra.mxu1 %v1352_v52 }
  0x6f   :  { %565 = vmatprep.subr.bf16.mxu0 %v1356_v53  ;;  %606 = vmatprep.subr.bf16.mxu1 %v1358_v54 }
  0x72   :  { %566 = vmatpush1.bf16.msra.mxu0 %v1362_v55  ;;  %607 = vmatpush1.bf16.msra.mxu1 %v1364_v56 }
  0x73   :  { %680 = vmatprep.subr.bf16.mxu0 %v1272_v21  ;;  %721 = vmatprep.subr.bf16.mxu1 %v1274_v23 }
  0xf5   :  { %v232_v57 = vpop.f32.mrf.mxu0  ;;  %v273_v58 = vpop.f32.mrf.mxu1 }
  0xf6   :  { %v1413_v8 = vadd.f32 %v232_v57, %v109_v6 }
  0xf7   :  { %v234_v59 = vpop.f32.mrf.mxu0  ;;  %v275_v60 = vpop.f32.mrf.mxu1 }
  0xf8   :  { %v1415_v11 = vadd.f32 %v234_v59, %v113_v7  ;;  %v1421_v57 = vadd.f32 %v275_v60, %v121_v22  ;;  %v117_v59 = vrot.slane %v92_v3, %v116_v29 }
  0xf9   :  { %v236_v61 = vpop.f32.mrf.mxu0  ;;  %v277_v62 = vpop.f32.mrf.mxu1 }
  0xfa   :  { %v1424_v62 = vadd.f32 %v273_v58, %v117_v59 }
  0xfb   :  { %v237_v63 = vpop.f32.mrf.mxu0  ;;  %v278_v1 = vpop.f32.mrf.mxu1 }
 0x115   :  { %v474_v9 = vpop.f32.mrf.mxu0  ;;  %v515_v10 = vpop.f32.mrf.mxu1 }
 0x116   :  { %v522_v12 = vadd.f32 %v474_v9, %v1413_v8  ;;  %v524_v2 = vadd.f32 %v515_v10, %v1424_v62 }
 0x117   :  { %v476_v14 = vpop.f32.mrf.mxu0  ;;  %v517_v15 = vpop.f32.mrf.mxu1 }
 0x118   :  { %v993_v16 = vmul.f32 -1.442695, %v522_v12  ;;  %v523_v17 = vadd.f32 %v476_v14, %v1415_v11  ;;  %v525_v61 = vadd.f32 %v517_v15, %v1421_v57 }
 0x119   :  { %v478_v18 = vpop.f32.mrf.mxu0  ;;  %v519_v19 = vpop.f32.mrf.mxu1 }
 0x11a   :  { %1074 = vpow2.f32 %v993_v16  ;;  %v994_v20 = vmul.f32 -1.442695, %v523_v17  ;;  %v995_v63 = vmul.f32 -1.442695, %v525_v61 }
 0x11b   :  { %v479_v24 = vpop.f32.mrf.mxu0  ;;  %v520_v25 = vpop.f32.mrf.mxu1 }
 0x11c   :  { %1076 = vpow2.f32 %v994_v20 }
 0x11d   :  { %1078 = vpow2.f32 %v995_v63 }
 0x127   :  { %v1075_v1 = vpop.eup %1074 }
 0x128   :  { %v529_v4 = vadd.f32 1.0, %v1075_v1 }
 0x129   :  { %v1077_v6 = vpop.eup %1076 }
 0x12a   :  { %1080 = vrcp.f32 %v529_v4  ;;  %v535_v7 = vadd.f32 1.0, %v1077_v6  ;;  %v1079_v9 = vpop.eup %1078 }
 0x12b   :  { %1082 = vtanh.f32 %v524_v2  ;;  %v542_v3 = vadd.f32 1.0, %v1079_v9 }
 0x12c   :  { %1084 = vrcp.f32 %v535_v7 }
 0x12d   :  { %1086 = vrcp.f32 %v542_v3 }
 0x137   :  { %v1081_v5 = vpop.eup %1080 }
 0x138   :  { %v1083_v60 = vpop.eup %1082 }
 0x139   :  { %v1085_v12 = vpop.eup %1084  ;;  %v546_v14 = vmul.f32 %v1083_v60, %v1081_v5 }
 0x13a   :  { %v545_v13 = vmul.f32 0.0, %v1085_v12  ;;  %v1087_v10 = vpop.eup %1086 }
 0x13c   :  { %v1427_v58 = vadd.f32 %v546_v14, %v545_v13 }
 0x13e   :  { %1088 = vtanh.f32 %v1427_v58 }
 0x14b   :  { %v1089_v15 = vpop.eup %1088 }
 0x14c   :  { %v549_v16 = vmul.f32 %v1089_v15, %v1087_v10 }
 0x14e   :  { %v550_v17 = vpack.c.bf16 %v549_v16, %v549_v16  ;;  %v669_v16 = vrot.slane %v1427_v58, 6 }
 0x150   :  { %584 = vmatmul.mubr.bf16.vlgmr.msra.gmra.mxu0 %v550_v17  ;;  %625 = vmatmul.mubr.bf16.vlgmr.msra.gmra.mxu1 %v550_v17 }
 0x151   :  { %681 = vmatpush1.bf16.msra.mxu0 %v1278_v26  ;;  %722 = vmatpush1.bf16.msra.mxu1 %v1280_v27 }
 0x152   :  { %682 = vmatprep.subr.bf16.mxu0 %v1282_v28  ;;  %723 = vmatprep.subr.bf16.mxu1 %v1284_v30 }
 0x153   :  { %712 = vmatprep.mubr.bf16.mxu0 %v1230_v0  ;;  %753 = vmatprep.mubr.bf16.mxu1 %v1230_v0 }
 0x155   :  { %683 = vmatpush1.bf16.msra.mxu0 %v1286_v31  ;;  %724 = vmatpush1.bf16.msra.mxu1 %v1290_v32 }
 0x156   :  { %684 = vmatprep.subr.bf16.mxu0 %v1292_v33  ;;  %725 = vmatprep.subr.bf16.mxu1 %v1296_v34 }
 0x159   :  { %685 = vmatpush1.bf16.msra.mxu0 %v1300_v35  ;;  %726 = vmatpush1.bf16.msra.mxu1 %v1302_v36 }
 0x15a   :  { %686 = vmatprep.subr.bf16.mxu0 %v1306_v37  ;;  %727 = vmatprep.subr.bf16.mxu1 %v1310_v38 }
 0x15d   :  { %687 = vmatpush1.bf16.msra.mxu0 %v1312_v39  ;;  %728 = vmatpush1.bf16.msra.mxu1 %v1316_v40 }
 0x15e   :  { %688 = vmatprep.subr.bf16.mxu0 %v1318_v41  ;;  %729 = vmatprep.subr.bf16.mxu1 %v1322_v42 }
 0x161   :  { %689 = vmatpush1.bf16.msra.mxu0 %v1326_v43  ;;  %730 = vmatpush1.bf16.msra.mxu1 %v1328_v44 }
 0x162   :  { %690 = vmatprep.subr.bf16.mxu0 %v1332_v45  ;;  %731 = vmatprep.subr.bf16.mxu1 %v1334_v46 }
 0x165   :  { %691 = vmatpush1.bf16.msra.mxu0 %v1338_v47  ;;  %732 = vmatpush1.bf16.msra.mxu1 %v1340_v48 }
 0x166   :  { %692 = vmatprep.subr.bf16.mxu0 %v1344_v49  ;;  %733 = vmatprep.subr.bf16.mxu1 %v1346_v50 }
 0x169   :  { %693 = vmatpush1.bf16.msra.mxu0 %v1350_v51  ;;  %734 = vmatpush1.bf16.msra.mxu1 %v1352_v52 }
 0x16a   :  { %694 = vmatprep.subr.bf16.mxu0 %v1356_v53  ;;  %735 = vmatprep.subr.bf16.mxu1 %v1358_v54 }
 0x16d   :  { %695 = vmatpush1.bf16.msra.mxu0 %v1362_v55  ;;  %736 = vmatpush1.bf16.msra.mxu1 %v1364_v56 }
 0x16e   :  { %809 = vmatprep.subr.bf16.mxu0 %v1272_v21  ;;  %850 = vmatprep.subr.bf16.mxu1 %v1274_v23 }
 0x210   :  { %v585_v18 = vpop.f32.mrf.mxu0  ;;  %v626_v19 = vpop.f32.mrf.mxu1 }
 0x211   :  { %v637_v20 = vrot.slane %v585_v18, 6  ;;  %v639_v7 = vrot.slane %v626_v19, 6 }
 0x212   :  { %v587_v22 = vpop.f32.mrf.mxu0  ;;  %v628_v24 = vpop.f32.mrf.mxu1 }
 0x213   :  { %v645_v25 = vadd.f32 %v637_v20, %v1413_v8  ;;  %v638_v29 = vrot.slane %v587_v22, 6  ;;  %v640_v21 = vrot.slane %v628_v24, 6  ;;  %v647_v60 = vadd.f32 %v639_v7, %v1424_v62 }
 0x214   :  { %v589_v59 = vpop.f32.mrf.mxu0  ;;  %v630_v61 = vpop.f32.mrf.mxu1 }
 0x215   :  { %v996_v63 = vmul.f32 -1.442695, %v645_v25  ;;  %v646_v1 = vadd.f32 %v638_v29, %v1415_v11  ;;  %v648_v23 = vadd.f32 %v640_v21, %v1421_v57 }
 0x216   :  { %v590_v2 = vpop.f32.mrf.mxu0  ;;  %v631_v4 = vpop.f32.mrf.mxu1 }
 0x217   :  { %1090 = vpow2.f32 %v996_v63  ;;  %v997_v6 = vmul.f32 -1.442695, %v646_v1  ;;  %v998_v9 = vmul.f32 -1.442695, %v648_v23 }
 0x219   :  { %1092 = vpow2.f32 %v997_v6 }
 0x21a   :  { %1094 = vpow2.f32 %v998_v9 }
 0x224   :  { %v1091_v5 = vpop.eup %1090 }
 0x225   :  { %v652_v12 = vadd.f32 1.0, %v1091_v5 }
 0x226   :  { %v1093_v3 = vpop.eup %1092 }
 0x227   :  { %1096 = vrcp.f32 %v652_v12  ;;  %v658_v13 = vadd.f32 1.0, %v1093_v3  ;;  %v1095_v14 = vpop.eup %1094 }
 0x228   :  { %1098 = vtanh.f32 %v647_v60  ;;  %v665_v18 = vadd.f32 1.0, %v1095_v14 }
 0x229   :  { %1100 = vrcp.f32 %v658_v13 }
 0x22a   :  { %1102 = vrcp.f32 %v665_v18 }
 0x234   :  { %v1097_v10 = vpop.eup %1096 }
 0x235   :  { %v1099_v15 = vpop.eup %1098 }
 0x236   :  { %v1101_v17 = vpop.eup %1100  ;;  %v672_v20 = vmul.f32 %v1099_v15, %v1097_v10 }
 0x237   :  { %v671_v19 = vmul.f32 %v1101_v17, %v669_v16  ;;  %v1103_v24 = vpop.eup %1102 }
 0x239   :  { %v1469_v22 = vadd.f32 %v672_v20, %v671_v19 }
 0x23b   :  { %1104 = vtanh.f32 %v1469_v22 }
 0x248   :  { %v1105_v25 = vpop.eup %1104 }
 0x249   :  { %v675_v29 = vmul.f32 %v1105_v25, %v1103_v24 }
 0x24b   :  { %v676_v59 = vpack.c.bf16 %v675_v29, %v675_v29 }
 0x24d   :  { %v678_v61 = vrot.slane %v676_v59, 1 }
 0x24f   :  { %713 = vmatmul.mubr.bf16.vlgmr.msra.gmra.mxu0 %v678_v61  ;;  %754 = vmatmul.mubr.bf16.vlgmr.msra.gmra.mxu1 %v678_v61 }
 0x250   :  { %810 = vmatpush1.bf16.msra.mxu0 %v1278_v26  ;;  %851 = vmatpush1.bf16.msra.mxu1 %v1280_v27 }
 0x251   :  { %811 = vmatprep.subr.bf16.mxu0 %v1282_v28  ;;  %852 = vmatprep.subr.bf16.mxu1 %v1284_v30 }
 0x252   :  { %841 = vmatprep.mubr.bf16.mxu0 %v1230_v0  ;;  %882 = vmatprep.mubr.bf16.mxu1 %v1230_v0 }
 0x254   :  { %812 = vmatpush1.bf16.msra.mxu0 %v1286_v31  ;;  %853 = vmatpush1.bf16.msra.mxu1 %v1290_v32 }
 0x255   :  { %813 = vmatprep.subr.bf16.mxu0 %v1292_v33  ;;  %854 = vmatprep.subr.bf16.mxu1 %v1296_v34 }
 0x258   :  { %814 = vmatpush1.bf16.msra.mxu0 %v1300_v35  ;;  %855 = vmatpush1.bf16.msra.mxu1 %v1302_v36 }
 0x259   :  { %815 = vmatprep.subr.bf16.mxu0 %v1306_v37  ;;  %856 = vmatprep.subr.bf16.mxu1 %v1310_v38 }
 0x25c   :  { %816 = vmatpush1.bf16.msra.mxu0 %v1312_v39  ;;  %857 = vmatpush1.bf16.msra.mxu1 %v1316_v40 }
 0x25d   :  { %817 = vmatprep.subr.bf16.mxu0 %v1318_v41  ;;  %858 = vmatprep.subr.bf16.mxu1 %v1322_v42 }
 0x260   :  { %818 = vmatpush1.bf16.msra.mxu0 %v1326_v43  ;;  %859 = vmatpush1.bf16.msra.mxu1 %v1328_v44 }
 0x261   :  { %819 = vmatprep.subr.bf16.mxu0 %v1332_v45  ;;  %860 = vmatprep.subr.bf16.mxu1 %v1334_v46 }
 0x264   :  { %820 = vmatpush1.bf16.msra.mxu0 %v1338_v47  ;;  %861 = vmatpush1.bf16.msra.mxu1 %v1340_v48 }
 0x265   :  { %821 = vmatprep.subr.bf16.mxu0 %v1344_v49  ;;  %862 = vmatprep.subr.bf16.mxu1 %v1346_v50 }
 0x268   :  { %822 = vmatpush1.bf16.msra.mxu0 %v1350_v51  ;;  %863 = vmatpush1.bf16.msra.mxu1 %v1352_v52  ;;  %v798_v52 = vrot.slane %v1469_v22, 6 }
 0x269   :  { %823 = vmatprep.subr.bf16.mxu0 %v1356_v53  ;;  %864 = vmatprep.subr.bf16.mxu1 %v1358_v54 }
 0x26c   :  { %824 = vmatpush1.bf16.msra.mxu0 %v1362_v55  ;;  %865 = vmatpush1.bf16.msra.mxu1 %v1364_v56 }
 0x30f   :  { %v714_v0 = vpop.f32.mrf.mxu0  ;;  %v755_v26 = vpop.f32.mrf.mxu1 }
 0x310   :  { %v766_v27 = vrot.slane %v714_v0, 4  ;;  %v768_v42 = vrot.slane %v755_v26, 4 }
 0x311   :  { %v716_v28 = vpop.f32.mrf.mxu0  ;;  %v757_v30 = vpop.f32.mrf.mxu1 }
 0x312   :  { %v774_v31 = vadd.f32 %v766_v27, %v1413_v8  ;;  %v767_v32 = vrot.slane %v716_v28, 4  ;;  %v769_v40 = vrot.slane %v757_v30, 4  ;;  %v776_v45 = vadd.f32 %v768_v42, %v1424_v62 }
 0x313   :  { %v718_v33 = vpop.f32.mrf.mxu0  ;;  %v759_v34 = vpop.f32.mrf.mxu1 }
 0x314   :  { %v999_v35 = vmul.f32 -1.442695, %v774_v31  ;;  %v775_v36 = vadd.f32 %v767_v32, %v1415_v11  ;;  %v777_v41 = vadd.f32 %v769_v40, %v1421_v57 }
 0x315   :  { %v719_v37 = vpop.f32.mrf.mxu0  ;;  %v760_v38 = vpop.f32.mrf.mxu1 }
 0x316   :  { %1106 = vpow2.f32 %v999_v35  ;;  %v1000_v39 = vmul.f32 -1.442695, %v775_v36  ;;  %v1001_v43 = vmul.f32 -1.442695, %v777_v41 }
 0x318   :  { %1108 = vpow2.f32 %v1000_v39 }
 0x319   :  { %1110 = vpow2.f32 %v1001_v43 }
 0x323   :  { %v1107_v44 = vpop.eup %1106 }
 0x324   :  { %v781_v46 = vadd.f32 1.0, %v1107_v44 }
 0x325   :  { %v1109_v47 = vpop.eup %1108 }
 0x326   :  { %1112 = vrcp.f32 %v781_v46  ;;  %v787_v48 = vadd.f32 1.0, %v1109_v47  ;;  %v1111_v49 = vpop.eup %1110 }
 0x327   :  { %1114 = vtanh.f32 %v776_v45  ;;  %v794_v54 = vadd.f32 1.0, %v1111_v49 }
 0x328   :  { %1116 = vrcp.f32 %v787_v48 }
 0x329   :  { %1118 = vrcp.f32 %v794_v54 }
 0x333   :  { %v1113_v50 = vpop.eup %1112 }
 0x334   :  { %v1115_v51 = vpop.eup %1114 }
 0x335   :  { %v1117_v53 = vpop.eup %1116  ;;  %v801_v55 = vmul.f32 %v1115_v51, %v1113_v50 }
 0x336   :  { %v800_v56 = vmul.f32 %v1117_v53, %v798_v52  ;;  %v1119_v63 = vpop.eup %1118 }
 0x338   :  { %v802_v58 = vadd.f32 %v801_v55, %v800_v56 }
 0x33a   :  { %1120 = vtanh.f32 %v802_v58  ;;  %v927_v26 = vrot.slane %v802_v58, 6 }
 0x347   :  { %v1121_v1 = vpop.eup %1120 }
 0x348   :  { %v804_v2 = vmul.f32 %v1121_v1, %v1119_v63 }
 0x34a   :  { %v805_v4 = vpack.c.bf16 %v804_v2, %v804_v2 }
 0x34c   :  { %v807_v6 = vrot.slane %v805_v4, 2 }
 0x34e   :  { %842 = vmatmul.mubr.bf16.vlgmr.msra.gmra.mxu0 %v807_v6  ;;  %883 = vmatmul.mubr.bf16.vlgmr.msra.gmra.mxu1 %v807_v6 }
 0x40e   :  { %v843_v21 = vpop.f32.mrf.mxu0  ;;  %v884_v23 = vpop.f32.mrf.mxu1 }
 0x40f   :  { %v895_v7 = vrot.slane %v843_v21, 2  ;;  %v897_v19 = vrot.slane %v884_v23, 2 }
 0x410   :  { %v845_v9 = vpop.f32.mrf.mxu0  ;;  %v886_v5 = vpop.f32.mrf.mxu1 }
 0x411   :  { %v903_v60 = vadd.f32 %v895_v7, %v1413_v8  ;;  %v896_v12 = vrot.slane %v845_v9, 2  ;;  %v898_v18 = vrot.slane %v886_v5, 2  ;;  %v905_v25 = vadd.f32 %v897_v19, %v1424_v62 }
 0x412   :  { %v847_v3 = vpop.f32.mrf.mxu0  ;;  %v888_v13 = vpop.f32.mrf.mxu1 }
 0x413   :  { %v1002_v14 = vmul.f32 -1.442695, %v903_v60  ;;  %v904_v10 = vadd.f32 %v896_v12, %v1415_v11  ;;  %v906_v20 = vadd.f32 %v898_v18, %v1421_v57 }
 0x414   :  { %v848_v15 = vpop.f32.mrf.mxu0  ;;  %v889_v16 = vpop.f32.mrf.mxu1 }
 0x415   :  { %1122 = vpow2.f32 %v1002_v14  ;;  %v1003_v17 = vmul.f32 -1.442695, %v904_v10  ;;  %v1004_v22 = vmul.f32 -1.442695, %v906_v20 }
 0x417   :  { %1124 = vpow2.f32 %v1003_v17 }
 0x418   :  { %1126 = vpow2.f32 %v1004_v22 }
 0x422   :  { %v1123_v24 = vpop.eup %1122 }
 0x423   :  { %v910_v8 = vadd.f32 1.0, %v1123_v24 }
 0x424   :  { %v1125_v29 = vpop.eup %1124 }
 0x425   :  { %1128 = vrcp.f32 %v910_v8  ;;  %v916_v59 = vadd.f32 1.0, %v1125_v29  ;;  %v1127_v11 = vpop.eup %1126 }
 0x426   :  { %1130 = vtanh.f32 %v905_v25  ;;  %v923_v28 = vadd.f32 1.0, %v1127_v11 }
 0x427   :  { %1132 = vrcp.f32 %v916_v59 }
 0x428   :  { %1134 = vrcp.f32 %v923_v28 }
 0x432   :  { %v1129_v61 = vpop.eup %1128 }
 0x433   :  { %v1131_v0 = vpop.eup %1130 }
 0x434   :  { %v1133_v27 = vpop.eup %1132  ;;  %v930_v30 = vmul.f32 %v1131_v0, %v1129_v61 }
 0x435   :  { %v929_v57 = vmul.f32 %v1133_v27, %v927_v26  ;;  %v1135_v62 = vpop.eup %1134 }
 0x437   :  { %v931_v31 = vadd.f32 %v930_v30, %v929_v57 }
 0x439   :  { %1136 = vtanh.f32 %v931_v31 }
 0x446   :  { %v1137_v32 = vpop.eup %1136 }
 0x447   :  { %v933_v33 = vmul.f32 %v1137_v32, %v1135_v62 }
 0x449   :  { %934 = vst [vmem:[#allocation8 - $0x6] sm:$0xc0] %v933_v33 }
 0x44a   :  { %1209 = shalt.err (!%p1206_p5)
}
 0x44b   :  { %944 = dma.vmem_to_hbm [thread:$0]  %s942_s6, 32, %s1520_s4, [#allocation4]  }
 0x44c   :  { %1222 = dma.done.wait [#allocation4], 32  }
 0x44d   :  { %1223 = vsyncadd [#allocation4], 4294967264 }
 0x44e   :  { %948 = vsyncpa [#allocation3], 1 }
 0x44f   :  { %949 = vsyncpa [#allocation6], 1 }
 0x450   :  { %950 = vsyncpa [#allocation4], 1 }

</bundles_post_ra>
